<compile_context>
chip_gen: v6e
topology: v6e:2x2x1
jax: 0.10.0
libtpu: 0.0.40
codegen_flags: <defaults>
</compile_context>

<pallas_src>
import math

import jax
import jax.numpy as jnp
from jax.experimental import pallas as pl
from jax.experimental.pallas import tpu as pltpu


# ----------------------------------------------------------------- TPU kernel
def _noise_kernel_tpu(seed_ref, a_ref, x_ref, o_ref):
    # seed_ref: SMEM (1,) int32 (scalar prefetch); a_ref: VMEM (R, 1);
    # x_ref / o_ref: VMEM (R, L).
    i = pl.program_id(0)
    j = pl.program_id(1)
    # Mix the grid position into the seed so every tile (and every TensorCore
    # on v7x) emits an independent noise block.
    pltpu.prng_seed(seed_ref[0] + i * pl.num_programs(1) + j)

    rows, lanes = x_ref.shape

    def uniform_1_2(shape):
        # Mantissa trick: OR the exponent of 1.0 onto 23 random mantissa bits
        # -> float32 uniform in [1.0, 2.0). No int->float convert, no scale.
        bits = pltpu.prng_random_bits(shape)
        return pltpu.bitcast((bits & 0x007FFFFF) | 0x3F800000, jnp.float32)

    two_pi = jnp.float32(2.0 * math.pi)
    if lanes % 2 == 0:
        # Draw bits for half the tile and use BOTH Box-Muller outputs.
        half = lanes // 2
        v1 = uniform_1_2((rows, half))
        v2 = uniform_1_2((rows, half))
        r = jnp.sqrt(-2.0 * jnp.log(2.0 - v1))       # 2 - v1 in (0, 1]: log-safe
        theta = two_pi * (v2 - 1.0)
        noise = jnp.concatenate([r * jnp.cos(theta), r * jnp.sin(theta)], axis=-1)
    else:
        v1 = uniform_1_2((rows, lanes))
        v2 = uniform_1_2((rows, lanes))
        r = jnp.sqrt(-2.0 * jnp.log(2.0 - v1))
        noise = r * jnp.cos(two_pi * (v2 - 1.0))

    # x + a * noise, with a broadcast (R, 1) -> (R, L)
    o_ref[...] = x_ref[...] + a_ref[...] * noise.astype(x_ref.dtype)


# ------------------------------------------------- portable fallback kernel
def _noise_add_kernel(a_ref, x_ref, n_ref, o_ref):
    o_ref[...] = x_ref[...] + a_ref[...] * n_ref[...]


def _pick_blocks(nc, hw):
    # Blocks must equal the full dim or be a multiple of (8, 128).
    row_blk = nc if nc <= 128 else 128
    lane_blk = hw if hw <= 1024 else 1024
    return row_blk, lane_blk


def noise_forward(x, a, seed):
    """Equivalent of Noise(ch)(x).

    x: (N, C, H, W) float32
    a: (ch, 1, 1) float32 with ch == C or ch == 1
    seed: python int controlling the noise realization
    """
    N, C, H, W = x.shape
    NC, HW = N * C, H * W

    # Per-row scale column: row r of the flattened (N*C, H*W) view has channel
    # r % C, which is exactly jnp.tile's repeat pattern. (ch==1 broadcasts.)
    a_col = jnp.tile(jnp.broadcast_to(a.reshape(-1), (C,)), (N,)).reshape(NC, 1)
    a_col = a_col.astype(x.dtype)
    x2 = x.reshape(NC, HW)           # contiguous -> free view, no transpose

    row_blk, lane_blk = _pick_blocks(NC, HW)
    grid = (pl.cdiv(NC, row_blk), pl.cdiv(HW, lane_blk))

    if jax.default_backend() == "tpu":
        seed_arr = jnp.array([seed], dtype=jnp.int32)
        grid_spec = pltpu.PrefetchScalarGridSpec(
            num_scalar_prefetch=1,
            grid=grid,
            in_specs=[
                pl.BlockSpec((row_blk, 1), lambda i, j, s_ref: (i, 0)),
                pl.BlockSpec((row_blk, lane_blk), lambda i, j, s_ref: (i, j)),
            ],
            out_specs=pl.BlockSpec((row_blk, lane_blk), lambda i, j, s_ref: (i, j)),
        )
        out2 = pl.pallas_call(
            _noise_kernel_tpu,
            out_shape=jax.ShapeDtypeStruct((NC, HW), x.dtype),
            grid_spec=grid_spec,
            compiler_params=pltpu.CompilerParams(
                dimension_semantics=("parallel", "parallel")),
        )(seed_arr, a_col, x2)
    else:
        # TODO(synk): pltpu.prng_seed / prng_random_bits have no CPU/interpret
        # lowering; generate the gaussian noise on the host and fuse only the
        # scaled add in the tiled kernel (same forward semantics).
        noise2 = jax.random.normal(jax.random.PRNGKey(seed), (NC, HW), dtype=x.dtype)
        out2 = pl.pallas_call(
            _noise_add_kernel,
            out_shape=jax.ShapeDtypeStruct((NC, HW), x.dtype),
            grid=grid,
            in_specs=[
                pl.BlockSpec((row_blk, 1), lambda i, j: (i, 0)),
                pl.BlockSpec((row_blk, lane_blk), lambda i, j: (i, j)),
                pl.BlockSpec((row_blk, lane_blk), lambda i, j: (i, j)),
            ],
            out_specs=pl.BlockSpec((row_blk, lane_blk), lambda i, j: (i, j)),
        )(a_col, x2, noise2)

    return out2.reshape(N, C, H, W)


if __name__ == "__main__":
    key = jax.random.PRNGKey(0)
    N, C, H, W = 2, 4, 16, 16

    x = jax.random.normal(key, (N, C, H, W), dtype=jnp.float32)

    # Parameter init exactly as Noise.__init__: a = zeros(ch, 1, 1)
    a_init = jnp.zeros((C, 1, 1), dtype=jnp.float32)
    out = jax.block_until_ready(noise_forward(x, a_init, seed=1234))
    assert out.shape == x.shape and out.dtype == x.dtype
    # With a == 0 (the module's init), output must equal the input exactly.
    assert bool(jnp.allclose(out, x)), "a=0 must be an exact no-op"

    # Non-zero (trained-like) per-channel std: noise must actually be added.
    a_nz = jnp.arange(1, C + 1, dtype=jnp.float32).reshape(C, 1, 1) * 0.1
    out_nz = jax.block_until_ready(noise_forward(x, a_nz, seed=1234))
    diff = (out_nz - x).reshape(N, C, -1)
    assert bool(jnp.all(jnp.std(diff, axis=(0, 2)) > 0.0)), "noise should be nonzero"

    print("KERNEL_OK")
</pallas_src>

<mosaic_0001>
module attributes {stable_mosaic.version = 11 : i64} {
  func.func @_noise_add_kernel(%arg0: i32, %arg1: i32, %arg2: memref<8x1xf32, #tpu.memory_space<vmem>>, %arg3: memref<8x256xf32, #tpu.memory_space<vmem>>, %arg4: memref<8x256xf32, #tpu.memory_space<vmem>>, %arg5: memref<8x256xf32, #tpu.memory_space<vmem>>) attributes {dimension_semantics = [#tpu.dimension_semantics<arbitrary>, #tpu.dimension_semantics<arbitrary>], iteration_bounds = array<i64: 1, 1>, scalar_prefetch = 0 : i64, scratch_operands = 0 : i64, tpu.core_type = #tpu.core_type<tc>, window_params = [{transform_indices = @transform_0, window_bounds = array<i64: 8, 1>}, {transform_indices = @transform_1, window_bounds = array<i64: 8, 256>}, {transform_indices = @transform_2, window_bounds = array<i64: 8, 256>}, {transform_indices = @transform_3, window_bounds = array<i64: 8, 256>}]} {
    %c0 = arith.constant 0 : index
    %c0_0 = arith.constant 0 : index
    %0 = vector.load %arg3[%c0, %c0_0] : memref<8x256xf32, #tpu.memory_space<vmem>>, vector<8x256xf32>
    %c0_1 = arith.constant 0 : index
    %c0_2 = arith.constant 0 : index
    %1 = vector.load %arg2[%c0_1, %c0_2] : memref<8x1xf32, #tpu.memory_space<vmem>>, vector<8x1xf32>
    %c0_3 = arith.constant 0 : index
    %c0_4 = arith.constant 0 : index
    %2 = vector.load %arg4[%c0_3, %c0_4] : memref<8x256xf32, #tpu.memory_space<vmem>>, vector<8x256xf32>
    %3 = vector.broadcast %1 : vector<8x1xf32> to vector<8x256xf32>
    %4 = arith.mulf %3, %2 : vector<8x256xf32>
    %5 = arith.addf %0, %4 : vector<8x256xf32>
    %c0_5 = arith.constant 0 : index
    %c0_6 = arith.constant 0 : index
    %6 = vector.load %arg5[%c0_5, %c0_6] : memref<8x256xf32, #tpu.memory_space<vmem>>, vector<8x256xf32>
    tpu.vector_store %arg5[%c0_5, %c0_6], %5 {strides = array<i32>} : memref<8x256xf32, #tpu.memory_space<vmem>>, vector<8x256xf32>,
    return
  }
  func.func @transform_0(%arg0: i32, %arg1: i32) -> (i32, i32) {
    %c0_i32 = arith.constant 0 : i32
    %c0_i32_0 = arith.constant 0 : i32
    return %arg0, %c0_i32 : i32, i32
  }
  func.func @transform_1(%arg0: i32, %arg1: i32) -> (i32, i32) {
    %c0_i32 = arith.constant 0 : i32
    return %arg0, %arg1 : i32, i32
  }
  func.func @transform_2(%arg0: i32, %arg1: i32) -> (i32, i32) {
    %c0_i32 = arith.constant 0 : i32
    return %arg0, %arg1 : i32, i32
  }
  func.func @transform_3(%arg0: i32, %arg1: i32) -> (i32, i32) {
    %c0_i32 = arith.constant 0 : i32
    return %arg0, %arg1 : i32, i32
  }
}

</mosaic_0001>

<bundles_post_ra>
// kernel: tpu_custom_call.1
= control target key start
LH: loop header
LB: loop body
LE: loop exit
PB: predicated region body
PF: predicated region fallthrough
CT: control target
= control target key end

     0   :  { %8 = vsyncpa [#allocation3], 0  ;;  %s178_s0 = inlined_call_operand.vmem [shape: f32[8,1], index: 0, kind: input, shape index: {}]   ;;  %s179_s1 = inlined_call_operand.hbm [shape: f32[8,256], index: 1, kind: input, shape index: {}]   ;;  %s180_s2 = inlined_call_operand.hbm [shape: f32[8,256], index: 2, kind: input, shape index: {}]   ;;  %s181_s3 = inlined_call_operand.hbm [shape: f32[8,256], index: 3, kind: output, shape index: {}]  }
   0x1   :  { %9 = vsyncpa [#allocation6], 0 }
   0x2   :  { %10 = vsyncpa [#allocation4], 0  ;;  %s142_s12 = smov [#allocation2]   ;;  %s143_s14 = smov [#allocation5]  }
   0x3   :  { %s19_s13 = sshll.u32 %s142_s12, 4  ;;  %s29_s15 = sshll.u32 %s143_s14, 4  ;;  %s20_s13 = int_to_ptr.vmem [resolvable:$true] %s19_s13  ;;  %s30_s15 = int_to_ptr.vmem [resolvable:$true] %s29_s15 }
   0x4   :  { %s84_s16 = scalar_lea.vmem %s20_s13, 256  ;;  %p89_p1 = scmp.lt.s32.totalorder %s20_s13, %s20_s13 }
   0x5   :  { %p85_p0 = scmp.ne.s32.totalorder %s20_s13, %s84_s16  ;;  %p90_p2 = scmp.lt.s32.totalorder %s84_s16, %s84_s16 }
   0x7   :  { %p91_p3 = por %p90_p2, %p89_p1 }
   0x9   :  { %p92_p4 = pnand %p91_p3, %p85_p0 }
   0xb   :  { %95 = shalt.err (!%p92_p4)
}
   0xc   :  { %22 = dma.hbm_to_vmem [thread:$0]  %s179_s1, 256, %s20_s13, [#allocation3]  }
   0xd   :  { %s104_s19 = scalar_lea.vmem %s30_s15, 256  ;;  %p109_p6 = scmp.lt.s32.totalorder %s30_s15, %s30_s15 }
   0xe   :  { %p105_p5 = scmp.ne.s32.totalorder %s30_s15, %s104_s19  ;;  %p110_p7 = scmp.lt.s32.totalorder %s104_s19, %s104_s19 }
  0x10   :  { %p111_p8 = por %p110_p7, %p109_p6 }
  0x12   :  { %p112_p9 = pnand %p111_p8, %p105_p5 }
  0x14   :  { %115 = shalt.err (!%p112_p9)
}
  0x15   :  { %32 = dma.hbm_to_vmem [thread:$0]  %s180_s2, 256, %s30_s15, [#allocation6]  }
  0x16   :  { %136 = dma.done.wait [#allocation3], 256  }
  0x17   :  { %137 = vsyncadd [#allocation3], 4294967040 }
  0x18   :  { %138 = dma.done.wait [#allocation6], 256  }
  0x19   :  { %139 = vsyncadd [#allocation6], 4294967040  ;;  %v144_v0 = vmov 0   ;;  %v41_v1 = vld [vmem:[%s178_s0] sm:$0xff]  ;;  %v42_v2 = vld [vmem:[#allocation5] sm:$0xff]  ;;  %s145_s1 = smov [#allocation7]  }
  0x1a   :  { %75 = vset.pattern.permute.xlu0 %v144_v0  ;;  %v43_v3 = vld [vmem:[#allocation5 + $0x8] sm:$0xff]  ;;  %v39_v5 = vld [vmem:[#allocation2] sm:$0xff]  ;;  %v40_v6 = vld [vmem:[#allocation2 + $0x8] sm:$0xff]  ;;  %s61_s24 = sshll.u32 %s145_s1, 4  ;;  %s62_s24 = int_to_ptr.vmem [resolvable:$true] %s61_s24 }
  0x1b   :  { %46 = vperm.xlu0 %75, %v41_v1   ;;  %s116_s2 = scalar_lea.vmem %s62_s24, 256  ;;  %p121_p11 = scmp.lt.s32.totalorder %s62_s24, %s62_s24 }
  0x1c   :  { %p117_p10 = scmp.ne.s32.totalorder %s62_s24, %s116_s2  ;;  %p122_p12 = scmp.lt.s32.totalorder %s116_s2, %s116_s2 }
  0x1e   :  { %p123_p13 = por %p122_p12, %p121_p11 }
  0x20   :  { %p124_p0 = pnand %p123_p13, %p117_p10 }
  0x96   :  { %v47_v4 = vpop.permute.xlu0 %46 }
  0x97   :  { %v49_v7 = vmul.f32 %v47_v4, %v42_v2  ;;  %v50_v8 = vmul.f32 %v47_v4, %v43_v3 }
  0x99   :  { %v51_v9 = vadd.f32 %v49_v7, %v39_v5  ;;  %v52_v10 = vadd.f32 %v50_v8, %v40_v6 }
  0x9b   :  { %53 = vst [vmem:[#allocation7] sm:$0xff] %v51_v9  ;;  %54 = vst [vmem:[#allocation7 + $0x8] sm:$0xff] %v52_v10 }
  0x9c   :  { %127 = shalt.err (!%p124_p0)
}
  0x9d   :  { %64 = dma.vmem_to_hbm [thread:$0]  %s62_s24, 256, %s181_s3, [#allocation4]  }
  0x9e   :  { %140 = dma.done.wait [#allocation4], 256  }
  0x9f   :  { %141 = vsyncadd [#allocation4], 4294967040 }
  0xa0   :  { %68 = vsyncpa [#allocation3], 1 }
  0xa1   :  { %69 = vsyncpa [#allocation6], 1 }
  0xa2   :  { %70 = vsyncpa [#allocation4], 1 }

</bundles_post_ra>
